<compile_context>
chip_gen: v7x
topology: tpu7x:2x2x1
jax: 0.10.0
libtpu: 0.0.40
codegen_flags: <defaults>
</compile_context>

<pallas_src>
import jax
import jax.numpy as jnp
from jax.experimental import pallas as pl
from jax.experimental.pallas import tpu as pltpu

# ----- sizes (consistent with the module's __init__ signature) -----
GSIZE = 3            # PhysObj.g
KSIZE = 4            # PhysObj.k  (k_enc sees ksize + 1 because of cat([k, t]))
HIDDEN = 32          # PhysObjEncoder hidden
QDIM = 2 * HIDDEN    # query = cat([Q(a), Q(b)])
MOD = 32             # emod / amod / bmod size
HC = 32              # ImplicitNeuralModule hidden width (shared by C and F)
C_OUT = 1            # C outputs a scalar pval
F_OUT = MOD          # F outputs a new modulation vector

LANES = 128
N_WBLK = 5                          # packed 128x128 weight blocks
BIAS_ROW = N_WBLK * LANES           # 640 (8-aligned)
P_ROWS = BIAS_ROW + 8               # 648
ENC_IN = 2 * (GSIZE + KSIZE + 1)    # 16 = [a_g|a_kt|b_g|b_kt]
MOD_OFF = ENC_IN                    # 16  : lane where [emod|amod|bmod] starts
ONE_LANE = MOD_OFF + 3 * MOD        # 112 : constant-1 lane (bias folding)
IN_LEN = ONE_LANE + 1               # 113 : used lanes of the activation row


# --------------------------------------------------------------------------- kernel
def event_kernel(x_ref, p_ref, out_ref):
    """Whole EventModule forward: 5 MXU pushes on a single (1,128) activation row."""
    relu = lambda v: jnp.maximum(v, 0.0)
    dot = lambda a, b: jnp.dot(a, b, preferred_element_type=jnp.float32)
    wblk = lambda i: p_ref[i * LANES:(i + 1) * LANES, :]        # (128,128) weight block
    brow = lambda i: p_ref[BIAS_ROW + i:BIAS_ROW + i + 1, :]    # (1,128) bias row

    x = x_ref[...]                                     # [enc_in | mods | 1 | 0...]

    # Both PhysObjEncoders at once (g_enc/k_enc block-diag, biases folded via 1-lane).
    h_enc = relu(dot(x, wblk(0)))                      # (1,128)=[genc_a|kenc_a|genc_b|kenc_b]

    # (encoder hidden Linear) ∘ (C/F layer-1 query cols) fused at pack time -> wblk(1).
    # C/F layer-1 mod cols + all layer-1 biases read the raw input row -> wblk(2).
    h1 = relu(dot(h_enc, wblk(1)) + dot(x, wblk(2)))   # lanes 0..31 = C, 32..63 = F

    h2 = relu(dot(h1, wblk(3)) + brow(0))              # C/F layer 2 (block-diagonal)
    out_ref[...] = dot(h2, wblk(4)) + brow(1)          # lanes 0..31 = fmod, lane 32 = pval


# --------------------------------------------------------------------------- params
def make_params(key):
    """Deterministic parameters, torch-Linear-style uniform(-1/sqrt(fan_in), ..)."""
    def lin(k, fan_in, fan_out):
        k1, k2 = jax.random.split(k)
        s = 1.0 / float(fan_in) ** 0.5
        w = jax.random.uniform(k1, (fan_in, fan_out), jnp.float32, -s, s)
        b = jax.random.uniform(k2, (1, fan_out), jnp.float32, -s, s)
        return w, b

    ks = jax.random.split(key, 9)
    p = {}
    # Q : PhysObjEncoder(gsize, ksize, hidden)
    p['wg'], p['bg'] = lin(ks[0], GSIZE, HIDDEN)
    p['wk'], p['bk'] = lin(ks[1], KSIZE + 1, HIDDEN)
    p['wh'], p['bh'] = lin(ks[2], 2 * HIDDEN, HIDDEN)
    # C : ImplicitNeuralModule(q_size=QDIM, mod=MOD, hidden=HC, out=1)
    p['c_w1'], p['c_b1'] = lin(ks[3], QDIM + MOD, HC)
    p['c_w2'], p['c_b2'] = lin(ks[4], HC, HC)
    p['c_wo'], p['c_bo'] = lin(ks[5], HC, C_OUT)
    # F : ImplicitNeuralModule(q_size=QDIM, mod=3*MOD, hidden=HC, out=MOD)
    p['f_w1'], p['f_b1'] = lin(ks[6], QDIM + 3 * MOD, HC)
    p['f_w2'], p['f_b2'] = lin(ks[7], HC, HC)
    p['f_wo'], p['f_bo'] = lin(ks[8], HC, F_OUT)
    return p


def pack_params(p):
    """Pack all weights/biases into one (648,128) f32 slab. Done ONCE at setup."""
    H, G, KT = HIDDEN, GSIZE, KSIZE + 1

    # block 0: g_enc / k_enc for objects a and b (block-diag), layer-0 biases in row 112.
    blkA = jnp.zeros((LANES, LANES), jnp.float32)
    blkA = (blkA
            .at[0:G, 0:H].set(p['wg'])
            .at[G:G + KT, H:2 * H].set(p['wk'])
            .at[G + KT:2 * G + KT, 2 * H:3 * H].set(p['wg'])
            .at[2 * G + KT:ENC_IN, 3 * H:4 * H].set(p['wk'])
            .at[ONE_LANE, 0:H].set(p['bg'][0])
            .at[ONE_LANE, H:2 * H].set(p['bk'][0])
            .at[ONE_LANE, 2 * H:3 * H].set(p['bg'][0])
            .at[ONE_LANE, 3 * H:4 * H].set(p['bk'][0]))

    # block 1: (encoder hidden Linear, per-object block-diag) ∘ (C/F layer-1 query cols).
    # There is no nonlinearity between them, so fuse at pack time (Linear∘Linear).
    w_hid = jnp.zeros((LANES, LANES), jnp.float32)
    w_hid = (w_hid.at[0:2 * H, 0:H].set(p['wh'])
                  .at[2 * H:4 * H, H:2 * H].set(p['wh']))
    w_q = jnp.zeros((LANES, LANES), jnp.float32)
    w_q = (w_q.at[0:QDIM, 0:HC].set(p['c_w1'][:QDIM])
              .at[0:QDIM, HC:2 * HC].set(p['f_w1'][:QDIM]))
    blkB = w_hid @ w_q

    # block 2: C/F layer-1 mod columns (read from the raw input row) + folded biases.
    bh_full = jnp.concatenate([p['bh'][0], p['bh'][0]])          # hidden-Linear bias, [qa|qb]
    blkC = jnp.zeros((LANES, LANES), jnp.float32)
    blkC = (blkC
            .at[MOD_OFF:MOD_OFF + MOD, 0:HC].set(p['c_w1'][QDIM:])          # C uses emod only
            .at[MOD_OFF:MOD_OFF + 3 * MOD, HC:2 * HC].set(p['f_w1'][QDIM:])  # F uses all three
            .at[ONE_LANE, 0:HC].set(p['c_b1'][0] + bh_full @ p['c_w1'][:QDIM])
            .at[ONE_LANE, HC:2 * HC].set(p['f_b1'][0] + bh_full @ p['f_w1'][:QDIM]))

    # block 3: C/F layer 2 (block-diagonal).
    blkD = jnp.zeros((LANES, LANES), jnp.float32)
    blkD = (blkD.at[0:HC, 0:HC].set(p['c_w2'])
                .at[HC:2 * HC, HC:2 * HC].set(p['f_w2']))

    # block 4: output layers -> fmod in lanes 0..31, pval in lane 32.
    blkE = jnp.zeros((LANES, LANES), jnp.float32)
    blkE = (blkE.at[HC:2 * HC, 0:F_OUT].set(p['f_wo'])
                .at[0:HC, F_OUT:F_OUT + C_OUT].set(p['c_wo']))

    # remaining explicit bias rows: layer-2 and output.
    bias = jnp.zeros((8, LANES), jnp.float32)
    bias = (bias
            .at[0, 0:HC].set(p['c_b2'][0]).at[0, HC:2 * HC].set(p['f_b2'][0])
            .at[1, 0:F_OUT].set(p['f_bo'][0])
            .at[1, F_OUT:F_OUT + C_OUT].set(p['c_bo'][0]))

    return jnp.concatenate([blkA, blkB, blkC, blkD, blkE, bias], axis=0)   # (648, 128)


# --------------------------------------------------------------------------- wrapper
@jax.jit
def event_forward(packed, a_g, a_k, a_t, b_g, b_k, b_t, emod, amod, bmod):
    # Per-call glue (the torch.cat()s on inputs): ONE concatenate + ONE pad into a
    # single lane-dense activation row with a constant-1 lane for bias folding.
    flat = jnp.concatenate([a_g, a_k, a_t, b_g, b_k, b_t, emod, amod, bmod,
                            jnp.ones((1,), jnp.float32)])
    x = jnp.pad(flat, (0, LANES - IN_LEN)).reshape(1, LANES)

    vmem = pl.BlockSpec(memory_space=pltpu.MemorySpace.VMEM)
    out = pl.pallas_call(
        event_kernel,
        out_shape=jax.ShapeDtypeStruct((1, LANES), jnp.float32),
        in_specs=[vmem, vmem],
        out_specs=vmem,
    )(x, packed)

    fmod = out[0, 0:F_OUT]                # (32,)
    pval = out[0, F_OUT:F_OUT + C_OUT]    # (1,)
    return pval, fmod


# --------------------------------------------------------------------------- reference
def ref_forward(p, a_g, a_k, a_t, b_g, b_k, b_t, emod, amod, bmod):
    """Pure-JAX reference of the assumed forward pass (uses the UNpacked params)."""
    def enc(g, k, t):
        genc = jax.nn.relu(g @ p['wg'] + p['bg'][0])
        kenc = jax.nn.relu(jnp.concatenate([k, t]) @ p['wk'] + p['bk'][0])
        return jnp.concatenate([genc, kenc]) @ p['wh'] + p['bh'][0]

    query = jnp.concatenate([enc(a_g, a_k, a_t), enc(b_g, b_k, b_t)])

    def inm(pre, mod):
        x = jax.nn.relu(jnp.concatenate([query, mod]) @ p[pre + 'w1'] + p[pre + 'b1'][0])
        x = jax.nn.relu(x @ p[pre + 'w2'] + p[pre + 'b2'][0])
        return x @ p[pre + 'wo'] + p[pre + 'bo'][0]

    return inm('c_', emod), inm('f_', jnp.concatenate([emod, amod, bmod]))


# --------------------------------------------------------------------------- main
if __name__ == "__main__":
    key = jax.random.PRNGKey(0)
    kp, kx = jax.random.split(key)
    params = make_params(kp)
    packed = jax.block_until_ready(pack_params(params))   # packed ONCE, reused per call

    ks = jax.random.split(kx, 9)
    a_g = jax.random.normal(ks[0], (GSIZE,), jnp.float32)
    a_k = jax.random.normal(ks[1], (KSIZE,), jnp.float32)
    a_t = jax.random.normal(ks[2], (1,), jnp.float32)
    b_g = jax.random.normal(ks[3], (GSIZE,), jnp.float32)
    b_k = jax.random.normal(ks[4], (KSIZE,), jnp.float32)
    b_t = jax.random.normal(ks[5], (1,), jnp.float32)
    emod = jax.random.normal(ks[6], (MOD,), jnp.float32)
    amod = jax.random.normal(ks[7], (MOD,), jnp.float32)
    bmod = jax.random.normal(ks[8], (MOD,), jnp.float32)

    pval, fmod = event_forward(packed, a_g, a_k, a_t, b_g, b_k, b_t, emod, amod, bmod)
    jax.block_until_ready((pval, fmod))

    pval_ref, fmod_ref = ref_forward(params, a_g, a_k, a_t, b_g, b_k, b_t,
                                     emod, amod, bmod)
    assert pval.shape == (C_OUT,) and fmod.shape == (F_OUT,)
    assert jnp.allclose(pval, pval_ref, atol=1e-3, rtol=1e-3)
    assert jnp.allclose(fmod, fmod_ref, atol=1e-3, rtol=1e-3)

    print("KERNEL_OK")
</pallas_src>

<mosaic_0001>
module attributes {stable_mosaic.version = 11 : i64} {
  func.func @event_kernel(%arg0: memref<1x128xf32, #tpu.memory_space<vmem>>, %arg1: memref<648x128xf32, #tpu.memory_space<vmem>>, %arg2: memref<1x128xf32, #tpu.memory_space<vmem>>) attributes {dimension_semantics = [], scalar_prefetch = 0 : i64, scratch_operands = 0 : i64, tpu.core_type = #tpu.core_type<tc>} {
    %c0 = arith.constant 0 : index
    %c0_0 = arith.constant 0 : index
    %0 = vector.load %arg0[%c0, %c0_0] : memref<1x128xf32, #tpu.memory_space<vmem>>, vector<1x128xf32>
    %c0_1 = arith.constant 0 : index
    %c0_2 = arith.constant 0 : index
    %1 = vector.load %arg1[%c0_1, %c0_2] : memref<648x128xf32, #tpu.memory_space<vmem>>, vector<128x128xf32>
    %cst = arith.constant dense<0.000000e+00> : vector<1x128xf32>
    %2 = tpu.matmul %0, %1, %cst {dimension_numbers = #tpu.dot_dimension_numbers<[1], [0], [0], [1], [0, 0, 1, 1], [], []>} : vector<1x128xf32>, vector<128x128xf32>, vector<1x128xf32> -> vector<1x128xf32>
    %cst_3 = arith.constant 0.000000e+00 : f32
    %3 = vector.broadcast %cst_3 : f32 to vector<1x128xf32>
    %4 = arith.maximumf %2, %3 : vector<1x128xf32>
    %c128 = arith.constant 128 : index
    %c0_4 = arith.constant 0 : index
    %5 = vector.load %arg1[%c128, %c0_4] : memref<648x128xf32, #tpu.memory_space<vmem>>, vector<128x128xf32>
    %cst_5 = arith.constant dense<0.000000e+00> : vector<1x128xf32>
    %6 = tpu.matmul %4, %5, %cst_5 {dimension_numbers = #tpu.dot_dimension_numbers<[1], [0], [0], [1], [0, 0, 1, 1], [], []>} : vector<1x128xf32>, vector<128x128xf32>, vector<1x128xf32> -> vector<1x128xf32>
    %c256 = arith.constant 256 : index
    %c0_6 = arith.constant 0 : index
    %7 = vector.load %arg1[%c256, %c0_6] : memref<648x128xf32, #tpu.memory_space<vmem>>, vector<128x128xf32>
    %cst_7 = arith.constant dense<0.000000e+00> : vector<1x128xf32>
    %8 = tpu.matmul %0, %7, %cst_7 {dimension_numbers = #tpu.dot_dimension_numbers<[1], [0], [0], [1], [0, 0, 1, 1], [], []>} : vector<1x128xf32>, vector<128x128xf32>, vector<1x128xf32> -> vector<1x128xf32>
    %9 = arith.addf %6, %8 : vector<1x128xf32>
    %cst_8 = arith.constant 0.000000e+00 : f32
    %10 = vector.broadcast %cst_8 : f32 to vector<1x128xf32>
    %11 = arith.maximumf %9, %10 : vector<1x128xf32>
    %c384 = arith.constant 384 : index
    %c0_9 = arith.constant 0 : index
    %12 = vector.load %arg1[%c384, %c0_9] : memref<648x128xf32, #tpu.memory_space<vmem>>, vector<128x128xf32>
    %cst_10 = arith.constant dense<0.000000e+00> : vector<1x128xf32>
    %13 = tpu.matmul %11, %12, %cst_10 {dimension_numbers = #tpu.dot_dimension_numbers<[1], [0], [0], [1], [0, 0, 1, 1], [], []>} : vector<1x128xf32>, vector<128x128xf32>, vector<1x128xf32> -> vector<1x128xf32>
    %c640 = arith.constant 640 : index
    %c0_11 = arith.constant 0 : index
    %14 = vector.load %arg1[%c640, %c0_11] : memref<648x128xf32, #tpu.memory_space<vmem>>, vector<1x128xf32>
    %15 = arith.addf %13, %14 : vector<1x128xf32>
    %cst_12 = arith.constant 0.000000e+00 : f32
    %16 = vector.broadcast %cst_12 : f32 to vector<1x128xf32>
    %17 = arith.maximumf %15, %16 : vector<1x128xf32>
    %c512 = arith.constant 512 : index
    %c0_13 = arith.constant 0 : index
    %18 = vector.load %arg1[%c512, %c0_13] : memref<648x128xf32, #tpu.memory_space<vmem>>, vector<128x128xf32>
    %cst_14 = arith.constant dense<0.000000e+00> : vector<1x128xf32>
    %19 = tpu.matmul %17, %18, %cst_14 {dimension_numbers = #tpu.dot_dimension_numbers<[1], [0], [0], [1], [0, 0, 1, 1], [], []>} : vector<1x128xf32>, vector<128x128xf32>, vector<1x128xf32> -> vector<1x128xf32>
    %c641 = arith.constant 641 : index
    %c0_15 = arith.constant 0 : index
    %20 = vector.load %arg1[%c641, %c0_15] : memref<648x128xf32, #tpu.memory_space<vmem>>, vector<1x128xf32>
    %21 = arith.addf %19, %20 : vector<1x128xf32>
    %c0_16 = arith.constant 0 : index
    %c0_17 = arith.constant 0 : index
    %22 = vector.load %arg2[%c0_16, %c0_17] : memref<1x128xf32, #tpu.memory_space<vmem>>, vector<1x128xf32>
    tpu.vector_store %arg2[%c0_16, %c0_17], %21 {strides = array<i32>} : memref<1x128xf32, #tpu.memory_space<vmem>>, vector<1x128xf32>,
    return
  }
}

</mosaic_0001>

<bundles_post_ra>
// kernel: event_forward.1
= control target key start
LH: loop header
LB: loop body
LE: loop exit
PB: predicated region body
PF: predicated region fallthrough
CT: control target
= control target key end

     0   :  { %7 = vsyncpa [#allocation3], 0  ;;  %s879_s9 = smov [#allocation2]   ;;  %s968_s0 = inlined_call_operand.vmem [shape: f32[1,128], index: 0, kind: input, shape index: {}]   ;;  %s969_s1 = inlined_call_operand.hbm [shape: f32[648,128], index: 1, kind: input, shape index: {}]   ;;  %s970_s2 = inlined_call_operand.vmem [shape: f32[1,128], index: 2, kind: output, shape index: {}]  }
   0x1   :  { %s15_s10 = sshll.u32 %s879_s9, 4  ;;  %s855_s13 = scalar_lea.hbm %s969_s1, 10368  ;;  %s16_s10 = int_to_ptr.vmem [resolvable:$true] %s15_s10 }
   0x2   :  { %p856_p0 = scmp.ne.s32.totalorder %s969_s1, %s855_s13  ;;  %p859_p1 = scmp.lt.u32.totalorder %s855_s13, %s969_s1 }
   0x4   :  { %p861_p2 = pnand %p859_p1, %p856_p0 }
   0x6   :  { %864 = shalt.err (!%p861_p2)
}
   0x7   :  { %s865_s18 = scalar_lea.vmem %s16_s10, 10368  ;;  %p870_p4 = scmp.lt.s32.totalorder %s16_s10, %s16_s10 }
   0x8   :  { %p866_p3 = scmp.ne.s32.totalorder %s16_s10, %s865_s18  ;;  %p871_p5 = scmp.lt.s32.totalorder %s865_s18, %s865_s18 }
   0xa   :  { %p872_p6 = por %p871_p5, %p870_p4 }
   0xc   :  { %p873_p7 = pnand %p872_p6, %p866_p3 }
   0xe   :  { %876 = shalt.err (!%p873_p7)
}
   0xf   :  { %s880_s19 = smov 128   ;;  %s881_s20 = smov 8  }
  0x10   :  { %21 = dma.hbm_to_vmem [thread:$0]  %s969_s1, 10368, %s16_s10, [#allocation3], %s880_s19, %s880_s19, %s881_s20  }
  0x11   :  { %877 = dma.done.wait [#allocation3], 10368  }
  0x12   :  { %878 = vsyncadd [#allocation3], 4294956928  ;;  %v882_v0 = vmov 0.0|0.0   ;;  %vm883_vm0 = vmmov 0   ;;  %v884_v1 = vmov 0.0   ;;  %v26_v2 = vld [vmem:[#allocation2] sm:$0xff] }
  0x13   :  { %727 = vmatprep.subr.bf16.mxu0 %v882_v0  ;;  %584 = vmatprep.mubr.msk.f32.mxu0 %vm883_vm0, %v884_v1  ;;  %v27_v3 = vld [vmem:[#allocation2 + $0x8] sm:$0xff]  ;;  %v28_v4 = vld [vmem:[#allocation2 + $0x10] sm:$0xff]  ;;  %v29_v6 = vld [vmem:[#allocation2 + $0x18] sm:$0xff] }
  0x14   :  { %751 = vmatprep.subr.bf16.mxu1 %v882_v0  ;;  %619 = vmatprep.mubr.msk.f32.mxu1 %vm883_vm0, %v884_v1  ;;  %v728_v5 = vpack.c.bf16 %v27_v3, %v26_v2  ;;  %v731_v7 = vpack.c.bf16 %v29_v6, %v28_v4  ;;  %v30_v8 = vld [vmem:[#allocation2 + $0x20] sm:$0xff]  ;;  %v31_v9 = vld [vmem:[#allocation2 + $0x28] sm:$0xff]  ;;  %v131_v12 = vld [vmem:[#allocation2 + $0x110] sm:$0xff] }
  0x15   :  { %v129_v10 = vld [vmem:[#allocation2 + $0x100] sm:$0xff]  ;;  %v130_v11 = vld [vmem:[#allocation2 + $0x108] sm:$0xff]  ;;  %v132_v13 = vld [vmem:[#allocation2 + $0x118] sm:$0xff]  ;;  %v734_v14 = vpack.c.bf16 %v31_v9, %v30_v8 }
  0x16   :  { %729 = vmatpush3.bf16.msra.mxu0 %v728_v5  ;;  %v752_v15 = vpack.c.bf16 %v130_v11, %v129_v10  ;;  %v32_v16 = vld [vmem:[#allocation2 + $0x30] sm:$0xff]  ;;  %v33_v17 = vld [vmem:[#allocation2 + $0x38] sm:$0xff]  ;;  %v755_v18 = vpack.c.bf16 %v132_v13, %v131_v12  ;;  %v133_v19 = vld [vmem:[#allocation2 + $0x120] sm:$0xff] }
  0x17   :  { %730 = vmatprep.subr.bf16.mxu0 %v882_v0  ;;  %v134_v20 = vld [vmem:[#allocation2 + $0x128] sm:$0xff]  ;;  %v737_v21 = vpack.c.bf16 %v33_v17, %v32_v16  ;;  %v34_v22 = vld [vmem:[#allocation2 + $0x40] sm:$0xff]  ;;  %v135_v25 = vld [vmem:[#allocation2 + $0x130] sm:$0xff] }
  0x18   :  { %753 = vmatpush3.bf16.msra.mxu1 %v752_v15  ;;  %v35_v23 = vld [vmem:[#allocation2 + $0x48] sm:$0xff]  ;;  %v758_v24 = vpack.c.bf16 %v134_v20, %v133_v19  ;;  %v136_v26 = vld [vmem:[#allocation2 + $0x138] sm:$0xff]  ;;  %v36_v28 = vld [vmem:[#allocation2 + $0x50] sm:$0xff] }
  0x19   :  { %754 = vmatprep.subr.bf16.mxu1 %v882_v0  ;;  %v740_v27 = vpack.c.bf16 %v35_v23, %v34_v22  ;;  %v37_v29 = vld [vmem:[#allocation2 + $0x58] sm:$0xff]  ;;  %v761_v30 = vpack.c.bf16 %v136_v26, %v135_v25  ;;  %v137_v31 = vld [vmem:[#allocation2 + $0x140] sm:$0xff]  ;;  %v138_v32 = vld [vmem:[#allocation2 + $0x148] sm:$0xff] }
  0x1a   :  { %732 = vmatpush3.bf16.msra.mxu0 %v731_v7  ;;  %v743_v33 = vpack.c.bf16 %v37_v29, %v36_v28  ;;  %v38_v34 = vld [vmem:[#allocation2 + $0x60] sm:$0xff]  ;;  %v39_v35 = vld [vmem:[#allocation2 + $0x68] sm:$0xff]  ;;  %v764_v36 = vpack.c.bf16 %v138_v32, %v137_v31  ;;  %v139_v37 = vld [vmem:[#allocation2 + $0x150] sm:$0xff] }
  0x1b   :  { %733 = vmatprep.subr.bf16.mxu0 %v882_v0  ;;  %v140_v38 = vld [vmem:[#allocation2 + $0x158] sm:$0xff]  ;;  %v746_v39 = vpack.c.bf16 %v39_v35, %v38_v34  ;;  %v40_v40 = vld [vmem:[#allocation2 + $0x70] sm:$0xff]  ;;  %v141_v43 = vld [vmem:[#allocation2 + $0x160] sm:$0xff] }
  0x1c   :  { %756 = vmatpush3.bf16.msra.mxu1 %v755_v18  ;;  %v41_v41 = vld [vmem:[#allocation2 + $0x78] sm:$0xff]  ;;  %v767_v42 = vpack.c.bf16 %v140_v38, %v139_v37  ;;  %v142_v44 = vld [vmem:[#allocation2 + $0x168] sm:$0xff]  ;;  %v143_v47 = vld [vmem:[#allocation2 + $0x170] sm:$0xff] }
  0x1d   :  { %757 = vmatprep.subr.bf16.mxu1 %v882_v0  ;;  %v749_v45 = vpack.c.bf16 %v41_v41, %v40_v40  ;;  %v770_v46 = vpack.c.bf16 %v142_v44, %v141_v43  ;;  %v144_v48 = vld [vmem:[#allocation2 + $0x178] sm:$0xff]  ;;  %v25_v49 = vld [vmem:[%s968_s0] sm:$0x1]  ;;  %v114_v52 = vld [vmem:[#allocation2 + $0x88] sm:$0xff] }
  0x1e   :  { %735 = vmatpush3.bf16.msra.mxu0 %v734_v14  ;;  %v773_v50 = vpack.c.bf16 %v144_v48, %v143_v47  ;;  %v113_v51 = vld [vmem:[#allocation2 + $0x80] sm:$0xff]  ;;  %v115_v54 = vld [vmem:[#allocation2 + $0x90] sm:$0xff]  ;;  %v116_v55 = vld [vmem:[#allocation2 + $0x98] sm:$0xff] }
  0x1f   :  { %736 = vmatprep.subr.bf16.mxu0 %v882_v0  ;;  %v776_v53 = vpack.c.bf16 %v114_v52, %v113_v51  ;;  %v779_v56 = vpack.c.bf16 %v116_v55, %v115_v54  ;;  %v117_v57 = vld [vmem:[#allocation2 + $0xa0] sm:$0xff]  ;;  %v118_v58 = vld [vmem:[#allocation2 + $0xa8] sm:$0xff]  ;;  %v119_v60 = vld [vmem:[#allocation2 + $0xb0] sm:$0xff] }
  0x20   :  { %759 = vmatpush3.bf16.msra.mxu1 %v758_v24  ;;  %v782_v59 = vpack.c.bf16 %v118_v58, %v117_v57  ;;  %v120_v61 = vld [vmem:[#allocation2 + $0xb8] sm:$0xff]  ;;  %v121_v63 = vld [vmem:[#allocation2 + $0xc0] sm:$0xff]  ;;  %v122_v2 = vld [vmem:[#allocation2 + $0xc8] sm:$0xff] }
  0x21   :  { %760 = vmatprep.subr.bf16.mxu1 %v882_v0  ;;  %v785_v62 = vpack.c.bf16 %v120_v61, %v119_v60  ;;  %v788_v3 = vpack.c.bf16 %v122_v2, %v121_v63  ;;  %v123_v4 = vld [vmem:[#allocation2 + $0xd0] sm:$0xff]  ;;  %v124_v5 = vld [vmem:[#allocation2 + $0xd8] sm:$0xff]  ;;  %v125_v7 = vld [vmem:[#allocation2 + $0xe0] sm:$0xff] }
  0x22   :  { %738 = vmatpush3.bf16.msra.mxu0 %v737_v21  ;;  %v791_v6 = vpack.c.bf16 %v124_v5, %v123_v4  ;;  %v126_v8 = vld [vmem:[#allocation2 + $0xe8] sm:$0xff]  ;;  %v127_v10 = vld [vmem:[#allocation2 + $0xf0] sm:$0xff]  ;;  %v128_v11 = vld [vmem:[#allocation2 + $0xf8] sm:$0xff] }
  0x23   :  { %739 = vmatprep.subr.bf16.mxu0 %v882_v0  ;;  %v794_v9 = vpack.c.bf16 %v126_v8, %v125_v7  ;;  %v797_v12 = vpack.c.bf16 %v128_v11, %v127_v10  ;;  %v286_v13 = vld [vmem:[#allocation2 + $0x180] sm:$0xff]  ;;  %v287_v14 = vld [vmem:[#allocation2 + $0x188] sm:$0xff]  ;;  %v288_v15 = vld [vmem:[#allocation2 + $0x190] sm:$0xff] }
  0x24   :  { %762 = vmatpush3.bf16.msra.mxu1 %v761_v30  ;;  %v800_v16 = vpack.c.bf16 %v287_v14, %v286_v13  ;;  %v289_v17 = vld [vmem:[#allocation2 + $0x198] sm:$0xff]  ;;  %v290_v19 = vld [vmem:[#allocation2 + $0x1a0] sm:$0xff]  ;;  %v291_v20 = vld [vmem:[#allocation2 + $0x1a8] sm:$0xff] }
  0x25   :  { %763 = vmatprep.subr.bf16.mxu1 %v882_v0  ;;  %v803_v18 = vpack.c.bf16 %v289_v17, %v288_v15  ;;  %v806_v21 = vpack.c.bf16 %v291_v20, %v290_v19  ;;  %v292_v22 = vld [vmem:[#allocation2 + $0x1b0] sm:$0xff]  ;;  %v293_v23 = vld [vmem:[#allocation2 + $0x1b8] sm:$0xff]  ;;  %v294_v25 = vld [vmem:[#allocation2 + $0x1c0] sm:$0xff] }
  0x26   :  { %741 = vmatpush3.bf16.msra.mxu0 %v740_v27  ;;  %v809_v24 = vpack.c.bf16 %v293_v23, %v292_v22  ;;  %v295_v26 = vld [vmem:[#allocation2 + $0x1c8] sm:$0xff]  ;;  %v296_v28 = vld [vmem:[#allocation2 + $0x1d0] sm:$0xff]  ;;  %v297_v29 = vld [vmem:[#allocation2 + $0x1d8] sm:$0xff] }
  0x27   :  { %742 = vmatprep.subr.bf16.mxu0 %v882_v0  ;;  %v812_v27 = vpack.c.bf16 %v295_v26, %v294_v25  ;;  %v815_v30 = vpack.c.bf16 %v297_v29, %v296_v28  ;;  %v298_v31 = vld [vmem:[#allocation2 + $0x1e0] sm:$0xff]  ;;  %v299_v32 = vld [vmem:[#allocation2 + $0x1e8] sm:$0xff]  ;;  %v300_v37 = vld [vmem:[#allocation2 + $0x1f0] sm:$0xff] }
  0x28   :  { %765 = vmatpush3.bf16.msra.mxu1 %v764_v36  ;;  %v301_v38 = vld [vmem:[#allocation2 + $0x1f8] sm:$0xff]  ;;  %v374_v40 = vld [vmem:[#allocation2 + $0x200] sm:$0xff]  ;;  %v375_v41 = vld [vmem:[#allocation2 + $0x208] sm:$0xff] }
  0x29   :  { %766 = vmatprep.subr.bf16.mxu1 %v882_v0  ;;  %v824_v43 = vpack.c.bf16 %v375_v41, %v374_v40  ;;  %v377_v47 = vld [vmem:[#allocation2 + $0x218] sm:$0xff]  ;;  %v380_v52 = vld [vmem:[#allocation2 + $0x230] sm:$0xff]  ;;  %v382_v55 = vld [vmem:[#allocation2 + $0x240] sm:$0xff] }
  0x2a   :  { %744 = vmatpush3.bf16.msra.mxu0 %v743_v33  ;;  %v818_v33 = vpack.c.bf16 %v299_v32, %v298_v31  ;;  %v385_v58 = vld [vmem:[#allocation2 + $0x258] sm:$0xff]  ;;  %v386_v60 = vld [vmem:[#allocation2 + $0x260] sm:$0xff]  ;;  %v387_v61 = vld [vmem:[#allocation2 + $0x268] sm:$0xff] }
  0x2b   :  { %745 = vmatprep.subr.bf16.mxu0 %v882_v0  ;;  %v388_v63 = vld [vmem:[#allocation2 + $0x270] sm:$0xff]  ;;  %v389_v2 = vld [vmem:[#allocation2 + $0x278] sm:$0xff]  ;;  %v302_v4 = vld [vmem:[#allocation2 + $0x280] sm:$0x1] }
  0x2c   :  { %768 = vmatpush3.bf16.msra.mxu1 %v767_v42 }
  0x2d   :  { %769 = vmatprep.subr.bf16.mxu1 %v882_v0 }
  0x2e   :  { %747 = vmatpush3.bf16.msra.mxu0 %v746_v39  ;;  %v821_v39 = vpack.c.bf16 %v301_v38, %v300_v37 }
  0x2f   :  { %748 = vmatprep.subr.bf16.mxu0 %v882_v0 }
  0x30   :  { %771 = vmatpush3.bf16.msra.mxu1 %v770_v46  ;;  %v376_v46 = vld [vmem:[#allocation2 + $0x210] sm:$0xff] }
  0x31   :  { %772 = vmatprep.subr.bf16.mxu1 %v882_v0  ;;  %v827_v48 = vpack.c.bf16 %v377_v47, %v376_v46 }
  0x32   :  { %750 = vmatpush3.bf16.msra.mxu0 %v749_v45 }
  0x33   :  { %799 = vmatprep.subr.bf16.mxu0 %v882_v0 }
  0x34   :  { %774 = vmatpush3.bf16.msra.mxu1 %v773_v50  ;;  %v379_v50 = vld [vmem:[#allocation2 + $0x228] sm:$0xff] }
  0x35   :  { %585 = vmatmul.mubr.f32.vlgmr.msra.gmra.mrb[0].mxu0 %v25_v49  ;;  %775 = vmatprep.subr.bf16.mxu1 %v882_v0 }
  0x36   :  { %689 = vmatprep.mubr.msk.f32.mxu0 %vm883_vm0, %v884_v1  ;;  %801 = vmatpush3.bf16.msra.mxu0 %v800_v16 }
  0x37   :  { %620 = vmatmul.mubr.f32.vlgmr.msra.gmra.mrb[0].mxu1 %v25_v49  ;;  %802 = vmatprep.subr.bf16.mxu0 %v882_v0  ;;  %v378_v49 = vld [vmem:[#allocation2 + $0x220] sm:$0xff] }
  0x38   :  { %777 = vmatpush3.bf16.msra.mxu1 %v776_v53  ;;  %654 = vmatprep.mubr.msk.f32.mxu1 %vm883_vm0, %v884_v1  ;;  %v830_v51 = vpack.c.bf16 %v379_v50, %v378_v49  ;;  %v381_v53 = vld [vmem:[#allocation2 + $0x238] sm:$0xff] }
  0x39   :  { %778 = vmatprep.subr.bf16.mxu1 %v882_v0  ;;  %v833_v54 = vpack.c.bf16 %v381_v53, %v380_v52 }
  0x3a   :  { %804 = vmatpush3.bf16.msra.mxu0 %v803_v18 }
  0x3b   :  { %805 = vmatprep.subr.bf16.mxu0 %v882_v0 }
  0x3c   :  { %780 = vmatpush3.bf16.msra.mxu1 %v779_v56  ;;  %v383_v56 = vld [vmem:[#allocation2 + $0x248] sm:$0xff] }
  0x3d   :  { %781 = vmatprep.subr.bf16.mxu1 %v882_v0  ;;  %v836_v57 = vpack.c.bf16 %v383_v56, %v382_v55 }
  0x3e   :  { %807 = vmatpush3.bf16.msra.mxu0 %v806_v21 }
  0x3f   :  { %808 = vmatprep.subr.bf16.mxu0 %v882_v0 }
  0x40   :  { %783 = vmatpush3.bf16.msra.mxu1 %v782_v59 }
  0x41   :  { %784 = vmatprep.subr.bf16.mxu1 %v882_v0 }
  0x42   :  { %810 = vmatpush3.bf16.msra.mxu0 %v809_v24 }
  0x43   :  { %811 = vmatprep.subr.bf16.mxu0 %v882_v0 }
  0x44   :  { %786 = vmatpush3.bf16.msra.mxu1 %v785_v62  ;;  %v842_v62 = vpack.c.bf16 %v387_v61, %v386_v60 }
  0x45   :  { %787 = vmatprep.subr.bf16.mxu1 %v882_v0 }
  0x46   :  { %813 = vmatpush3.bf16.msra.mxu0 %v812_v27 }
  0x47   :  { %814 = vmatprep.subr.bf16.mxu0 %v882_v0 }
  0x48   :  { %789 = vmatpush3.bf16.msra.mxu1 %v788_v3  ;;  %v845_v3 = vpack.c.bf16 %v389_v2, %v388_v63 }
  0x49   :  { %790 = vmatprep.subr.bf16.mxu1 %v882_v0 }
  0x4a   :  { %816 = vmatpush3.bf16.msra.mxu0 %v815_v30 }
  0x4b   :  { %817 = vmatprep.subr.bf16.mxu0 %v882_v0 }
  0x4c   :  { %792 = vmatpush3.bf16.msra.mxu1 %v791_v6 }
  0x4d   :  { %793 = vmatprep.subr.bf16.mxu1 %v882_v0 }
  0x4e   :  { %819 = vmatpush3.bf16.msra.mxu0 %v818_v33 }
  0x4f   :  { %820 = vmatprep.subr.bf16.mxu0 %v882_v0 }
  0x50   :  { %795 = vmatpush3.bf16.msra.mxu1 %v794_v9  ;;  %v390_v9 = vld [vmem:[#allocation2 + $0x281] sm:$0x1] }
  0x51   :  { %796 = vmatprep.subr.bf16.mxu1 %v882_v0 }
  0x52   :  { %822 = vmatpush3.bf16.msra.mxu0 %v821_v39 }
  0x53   :  { %823 = vmatprep.subr.bf16.mxu0 %v882_v0 }
  0x54   :  { %798 = vmatpush3.bf16.msra.mxu1 %v797_v12 }
 0x108   :  { %v108_v34 = vpop.f32.mrb[0].mxu0 }
 0x109   :  { %v112_v35 = vmax.f32 %v108_v34, 0.0  ;;  %v586_v36 = vpop.f32.mrb[1].mxu0 }
 0x10b   :  { %655 = vmatmul.mubr.f32.vlgmr.msra.gmra.mrb[0].mxu1 %v112_v35 }
 0x1de   :  { %v281_v42 = vpop.f32.mrb[0].mxu1 }
 0x1df   :  { %v285_v44 = vmax.f32 %v281_v42, 0.0  ;;  %v656_v45 = vpop.f32.mrb[1].mxu1 }
 0x1e1   :  { %690 = vmatmul.mubr.f32.vlgmr.msra.gmra.mrb[2].mxu0 %v285_v44 }
 0x1e2   :  { %825 = vmatpush3.bf16.msra.mxu0 %v824_v43  ;;  %724 = vmatprep.mubr.msk.f32.mxu0 %vm883_vm0, %v884_v1  ;;  %v384_v1 = vld [vmem:[#allocation2 + $0x250] sm:$0xff] }
 0x1e3   :  { %826 = vmatprep.subr.bf16.mxu0 %v882_v0  ;;  %v839_v59 = vpack.c.bf16 %v385_v58, %v384_v1 }
 0x1e6   :  { %828 = vmatpush3.bf16.msra.mxu0 %v827_v48 }
 0x1e7   :  { %829 = vmatprep.subr.bf16.mxu0 %v882_v0 }
 0x1ea   :  { %831 = vmatpush3.bf16.msra.mxu0 %v830_v51 }
 0x1eb   :  { %832 = vmatprep.subr.bf16.mxu0 %v882_v0 }
 0x1ee   :  { %834 = vmatpush3.bf16.msra.mxu0 %v833_v54 }
 0x1ef   :  { %835 = vmatprep.subr.bf16.mxu0 %v882_v0 }
 0x1f2   :  { %837 = vmatpush3.bf16.msra.mxu0 %v836_v57 }
 0x1f3   :  { %838 = vmatprep.subr.bf16.mxu0 %v882_v0 }
 0x1f6   :  { %840 = vmatpush3.bf16.msra.mxu0 %v839_v59 }
 0x1f7   :  { %841 = vmatprep.subr.bf16.mxu0 %v882_v0 }
 0x1fa   :  { %843 = vmatpush3.bf16.msra.mxu0 %v842_v62 }
 0x1fb   :  { %844 = vmatprep.subr.bf16.mxu0 %v882_v0 }
 0x1fe   :  { %846 = vmatpush3.bf16.msra.mxu0 %v845_v3 }
 0x2b4   :  { %v369_v5 = vpop.f32.mrb[2].mxu0 }
 0x2b5   :  { %v370_v6 = vadd.f32 %v369_v5, %v302_v4  ;;  %v691_v7 = vpop.f32.mrb[3].mxu0 }
 0x2b7   :  { %v373_v8 = vmax.f32 %v370_v6, 0.0 }
 0x2b9   :  { %725 = vmatmul.mubr.f32.vlgmr.msra.gmra.mrb[4].mxu0 %v373_v8 }
 0x38c   :  { %v457_v10 = vpop.f32.mrb[4].mxu0 }
 0x38d   :  { %v458_v11 = vadd.f32 %v457_v10, %v390_v9  ;;  %v726_v12 = vpop.f32.mrb[5].mxu0 }
 0x38f   :  { %461 = vst [vmem:[%s970_s2] sm:$0x1] %v458_v11 }
 0x390   :  { %466 = vsyncpa [#allocation3], 1 }

</bundles_post_ra>
